<compile_context>
chip_gen: v7x
topology: tpu7x:2x2x1
jax: 0.10.0
libtpu: 0.0.40
codegen_flags: <defaults>
</compile_context>

<pallas_src>
import jax
import jax.numpy as jnp
from jax import lax
from jax.experimental import pallas as pl
from jax.experimental.pallas import tpu as pltpu

# ----------------------------- model dimensions -----------------------------
N_POINTS = 256          # number of input points (example)
C_FEAT   = 13           # per-point input feature channels
C_COORD  = 3            # raw xyz coordinates
C_IN     = C_FEAT + C_COORD   # 16
D_HIDDEN = 32           # backbone / query embedding dim
N_QUERY  = 16           # instance queries
N_CLASS  = 8            # semantic classes
MAX_TILE_N = 8192       # lane-axis tile (sweep 8K-32K; 8K fits every chip's VMEM)
_LANE = 128


def _round_up(a, b):
    return ((a + b - 1) // b) * b


# ------------------------------ Pallas kernel -------------------------------
def _fused_mask_kernel(x_ref, coords_ref, w1x_t_ref, w1c_t_ref, b1_t_ref,
                       wq_ref, bq_t_ref, maskt_ref):
    """Fused backbone + mask head, feature-major output, native-layout inputs.

    x_ref      : (tile_n, C_FEAT)      VMEM   raw point features (native layout)
    coords_ref : (tile_n, C_COORD)     VMEM   raw xyz (native layout)
    w1x_t_ref  : (D_HIDDEN, C_FEAT)    VMEM   W1[:C_FEAT]^T
    w1c_t_ref  : (D_HIDDEN, C_COORD)   VMEM   W1[C_FEAT:]^T
    b1_t_ref   : (D_HIDDEN, 1)         VMEM   b1^T
    wq_ref     : (N_QUERY, D_HIDDEN)   VMEM   Q_embed @ W2^T   (fused mask head)
    bq_t_ref   : (N_QUERY, 1)          VMEM   Q_embed @ b2^T
    maskt_ref  : (N_QUERY, tile_n)     VMEM   mask logits^T (lane-dense output)
    """
    # Contract the last dims of both operands (== trans_b): the input transpose
    # happens in the MXU operand path, not as an HBM pass.
    contract_last = (((1,), (1,)), ((), ()))

    # h^T = relu(W1x^T @ x^T + W1c^T @ coords^T + b1^T)       [D_HIDDEN, tile_n]
    h_t = lax.dot_general(w1x_t_ref[...], x_ref[...], contract_last,
                          preferred_element_type=jnp.float32)
    h_t = h_t + lax.dot_general(w1c_t_ref[...], coords_ref[...], contract_last,
                                preferred_element_type=jnp.float32)
    h_t = jnp.maximum(h_t + b1_t_ref[...], 0.0)

    # mask^T = (Q_embed @ W2^T) @ h^T + Q_embed @ b2^T         [N_QUERY, tile_n]
    maskt_ref[...] = (
        jnp.dot(wq_ref[...], h_t, preferred_element_type=jnp.float32)
        + bq_t_ref[...])


# --------------------------- one-time param prep -----------------------------
def prepare_params(params):
    """Fold / transpose weights once (not per call); precompute the class head."""
    w1 = params["w1"].astype(jnp.float32)          # [C_IN, D_HIDDEN]
    b1 = params["b1"].astype(jnp.float32)          # [1, D_HIDDEN]
    w2 = params["w2"].astype(jnp.float32)          # [D_HIDDEN, D_HIDDEN]
    b2 = params["b2"].astype(jnp.float32)          # [1, D_HIDDEN]
    q_embed = params["q_embed"].astype(jnp.float32)  # [N_QUERY, D_HIDDEN]
    wc = params["wc"].astype(jnp.float32)          # [D_HIDDEN, N_CLASS]
    bc = params["bc"].astype(jnp.float32)          # [1, N_CLASS]
    return {
        "w1x_t": w1[:C_FEAT].T,                    # [D_HIDDEN, C_FEAT]
        "w1c_t": w1[C_FEAT:].T,                    # [D_HIDDEN, C_COORD]
        "b1_t":  b1.T,                             # [D_HIDDEN, 1]
        "wq":    q_embed @ w2.T,                   # [N_QUERY, D_HIDDEN]
        "bq_t":  q_embed @ b2.T,                   # [N_QUERY, 1]
        # Class head is input-independent -> computed exactly once, here.
        "pred_logits": q_embed @ wc + bc,          # [N_QUERY, N_CLASS]
    }


# ------------------------------ forward wrapper ------------------------------
@jax.jit
def instance_segmentation_forward(x, raw_coordinates, prep):
    """Pallas forward pass. x: [N, C_FEAT], raw_coordinates: [N, 3]."""
    x = x.astype(jnp.float32)
    coords = raw_coordinates.astype(jnp.float32)
    n = x.shape[0]

    # Pad the point axis to a lane-dense multiple of 128 (and of the tile for
    # large N).  Padded rows compute garbage that is sliced off afterwards.
    n_pad = _round_up(max(n, _LANE), _LANE)
    if n_pad <= MAX_TILE_N:
        tile_n = n_pad
    else:
        tile_n = MAX_TILE_N
        n_pad = _round_up(n_pad, tile_n)
    if n_pad != n:
        x = jnp.pad(x, ((0, n_pad - n), (0, 0)))
        coords = jnp.pad(coords, ((0, n_pad - n), (0, 0)))

    grid = (n_pad // tile_n,)
    full = lambda i: (0, 0)

    mask_t = pl.pallas_call(
        _fused_mask_kernel,
        out_shape=jax.ShapeDtypeStruct((N_QUERY, n_pad), jnp.float32),
        grid_spec=pltpu.PrefetchScalarGridSpec(
            num_scalar_prefetch=0,
            grid=grid,
            in_specs=[
                pl.BlockSpec((tile_n, C_FEAT), lambda i: (i, 0)),     # x
                pl.BlockSpec((tile_n, C_COORD), lambda i: (i, 0)),    # coords
                pl.BlockSpec((D_HIDDEN, C_FEAT), full),               # W1x^T
                pl.BlockSpec((D_HIDDEN, C_COORD), full),              # W1c^T
                pl.BlockSpec((D_HIDDEN, 1), full),                    # b1^T
                pl.BlockSpec((N_QUERY, D_HIDDEN), full),              # Wq
                pl.BlockSpec((N_QUERY, 1), full),                     # bq^T
            ],
            out_specs=pl.BlockSpec((N_QUERY, tile_n), lambda i: (0, i)),
        ),
        compiler_params=pltpu.CompilerParams(
            # Point axis is independent per tile -> shard across both TCs (v7x).
            dimension_semantics=("parallel",),
            # Explicit scoped-VMEM limit so tile_n=8192 also fits v5e's default.
            vmem_limit_bytes=32 * 1024 * 1024,
        ),
    )(x, coords, prep["w1x_t"], prep["w1c_t"], prep["b1_t"],
      prep["wq"], prep["bq_t"])

    # Module semantics: pred_masks is [N, Q].  (For large N a consumer that can
    # take [Q, N] should use `mask_t` directly and skip this HBM pass.)
    pred_masks = mask_t[:, :n].T
    return {"pred_masks": pred_masks, "pred_logits": prep["pred_logits"]}


# ------------------------------ synthetic params -----------------------------
def make_params(key):
    """Deterministic synthetic parameter init (stand-in for checkpoint).

    Biases are nonzero so the kernel's broadcast-add paths are actually tested.
    """
    ks = jax.random.split(key, 7)
    scale = lambda fan_in: 1.0 / jnp.sqrt(jnp.float32(fan_in))
    return {
        "w1": jax.random.normal(ks[0], (C_IN, D_HIDDEN), jnp.float32) * scale(C_IN),
        "b1": jax.random.normal(ks[1], (1, D_HIDDEN), jnp.float32) * 0.1,
        "w2": jax.random.normal(ks[2], (D_HIDDEN, D_HIDDEN), jnp.float32) * scale(D_HIDDEN),
        "b2": jax.random.normal(ks[3], (1, D_HIDDEN), jnp.float32) * 0.1,
        "q_embed": jax.random.normal(ks[4], (N_QUERY, D_HIDDEN), jnp.float32) * scale(D_HIDDEN),
        "wc": jax.random.normal(ks[5], (D_HIDDEN, N_CLASS), jnp.float32) * scale(D_HIDDEN),
        "bc": jax.random.normal(ks[6], (1, N_CLASS), jnp.float32) * 0.1,
    }


def _reference_forward(x, raw_coordinates, params):
    """Pure-JAX reference for correctness checking."""
    feats = jnp.concatenate([x, raw_coordinates], axis=-1)
    h = jnp.maximum(feats @ params["w1"] + params["b1"], 0.0)
    f = h @ params["w2"] + params["b2"]
    masks = f @ params["q_embed"].T
    logits = params["q_embed"] @ params["wc"] + params["bc"]
    return {"pred_masks": masks, "pred_logits": logits}


if __name__ == "__main__":
    key = jax.random.PRNGKey(0)
    k_x, k_c, k_p = jax.random.split(key, 3)

    params = make_params(k_p)
    prep = prepare_params(params)

    # Case 1: lane-aligned point count.
    x = jax.random.normal(k_x, (N_POINTS, C_FEAT), jnp.float32)
    raw_coordinates = jax.random.uniform(k_c, (N_POINTS, C_COORD), jnp.float32)
    out = jax.block_until_ready(instance_segmentation_forward(x, raw_coordinates, prep))
    ref = _reference_forward(x, raw_coordinates, params)
    assert out["pred_masks"].shape == (N_POINTS, N_QUERY)
    assert out["pred_logits"].shape == (N_QUERY, N_CLASS)
    assert jnp.allclose(out["pred_masks"], ref["pred_masks"], atol=1e-4, rtol=1e-4)
    assert jnp.allclose(out["pred_logits"], ref["pred_logits"], atol=1e-4, rtol=1e-4)

    # Case 2: non-128-multiple point count (exercises the padding path).
    n2 = 200
    x2 = x[:n2]
    c2 = raw_coordinates[:n2]
    out2 = jax.block_until_ready(instance_segmentation_forward(x2, c2, prep))
    ref2 = _reference_forward(x2, c2, params)
    assert out2["pred_masks"].shape == (n2, N_QUERY)
    assert jnp.allclose(out2["pred_masks"], ref2["pred_masks"], atol=1e-4, rtol=1e-4)

    print("KERNEL_OK")
</pallas_src>

<mosaic_0001>
module attributes {stable_mosaic.version = 11 : i64} {
  func.func @_fused_mask_kernel(%arg0: i32, %arg1: memref<256x13xf32, #tpu.memory_space<vmem>>, %arg2: memref<256x3xf32, #tpu.memory_space<vmem>>, %arg3: memref<32x13xf32, #tpu.memory_space<vmem>>, %arg4: memref<32x3xf32, #tpu.memory_space<vmem>>, %arg5: memref<32x1xf32, #tpu.memory_space<vmem>>, %arg6: memref<16x32xf32, #tpu.memory_space<vmem>>, %arg7: memref<16x1xf32, #tpu.memory_space<vmem>>, %arg8: memref<16x256xf32, #tpu.memory_space<vmem>>) attributes {dimension_semantics = [#tpu.dimension_semantics<parallel>], iteration_bounds = array<i64: 1>, scalar_prefetch = 0 : i64, scratch_operands = 0 : i64, tpu.core_type = #tpu.core_type<tc>, window_params = [{transform_indices = @transform_0, window_bounds = array<i64: 256, 13>}, {transform_indices = @transform_1, window_bounds = array<i64: 256, 3>}, {pipeline_mode = #tpu.pipeline_mode<synchronous>, transform_indices = @transform_2, window_bounds = array<i64: 32, 13>}, {pipeline_mode = #tpu.pipeline_mode<synchronous>, transform_indices = @transform_3, window_bounds = array<i64: 32, 3>}, {pipeline_mode = #tpu.pipeline_mode<synchronous>, transform_indices = @transform_4, window_bounds = array<i64: 32, 1>}, {pipeline_mode = #tpu.pipeline_mode<synchronous>, transform_indices = @transform_5, window_bounds = array<i64: 16, 32>}, {pipeline_mode = #tpu.pipeline_mode<synchronous>, transform_indices = @transform_6, window_bounds = array<i64: 16, 1>}, {transform_indices = @transform_7, window_bounds = array<i64: 16, 256>}]} {
    %c0 = arith.constant 0 : index
    %c0_0 = arith.constant 0 : index
    %0 = vector.load %arg3[%c0, %c0_0] : memref<32x13xf32, #tpu.memory_space<vmem>>, vector<32x13xf32>
    %c0_1 = arith.constant 0 : index
    %c0_2 = arith.constant 0 : index
    %1 = vector.load %arg1[%c0_1, %c0_2] : memref<256x13xf32, #tpu.memory_space<vmem>>, vector<256x13xf32>
    %cst = arith.constant dense<0.000000e+00> : vector<32x256xf32>
    %2 = tpu.matmul %0, %1, %cst {dimension_numbers = #tpu.dot_dimension_numbers<[1], [1], [0], [0], [0, 0, 1, 0], [], []>} : vector<32x13xf32>, vector<256x13xf32>, vector<32x256xf32> -> vector<32x256xf32>
    %c0_3 = arith.constant 0 : index
    %c0_4 = arith.constant 0 : index
    %3 = vector.load %arg4[%c0_3, %c0_4] : memref<32x3xf32, #tpu.memory_space<vmem>>, vector<32x3xf32>
    %c0_5 = arith.constant 0 : index
    %c0_6 = arith.constant 0 : index
    %4 = vector.load %arg2[%c0_5, %c0_6] : memref<256x3xf32, #tpu.memory_space<vmem>>, vector<256x3xf32>
    %cst_7 = arith.constant dense<0.000000e+00> : vector<32x256xf32>
    %5 = tpu.matmul %3, %4, %cst_7 {dimension_numbers = #tpu.dot_dimension_numbers<[1], [1], [0], [0], [0, 0, 1, 0], [], []>} : vector<32x3xf32>, vector<256x3xf32>, vector<32x256xf32> -> vector<32x256xf32>
    %6 = arith.addf %2, %5 : vector<32x256xf32>
    %c0_8 = arith.constant 0 : index
    %c0_9 = arith.constant 0 : index
    %7 = vector.load %arg5[%c0_8, %c0_9] : memref<32x1xf32, #tpu.memory_space<vmem>>, vector<32x1xf32>
    %8 = vector.broadcast %7 : vector<32x1xf32> to vector<32x256xf32>
    %9 = arith.addf %6, %8 : vector<32x256xf32>
    %cst_10 = arith.constant 0.000000e+00 : f32
    %10 = vector.broadcast %cst_10 : f32 to vector<32x256xf32>
    %11 = arith.maximumf %9, %10 : vector<32x256xf32>
    %c0_11 = arith.constant 0 : index
    %c0_12 = arith.constant 0 : index
    %12 = vector.load %arg6[%c0_11, %c0_12] : memref<16x32xf32, #tpu.memory_space<vmem>>, vector<16x32xf32>
    %cst_13 = arith.constant dense<0.000000e+00> : vector<16x256xf32>
    %13 = tpu.matmul %12, %11, %cst_13 {dimension_numbers = #tpu.dot_dimension_numbers<[1], [0], [0], [1], [0, 0, 1, 1], [], []>} : vector<16x32xf32>, vector<32x256xf32>, vector<16x256xf32> -> vector<16x256xf32>
    %c0_14 = arith.constant 0 : index
    %c0_15 = arith.constant 0 : index
    %14 = vector.load %arg7[%c0_14, %c0_15] : memref<16x1xf32, #tpu.memory_space<vmem>>, vector<16x1xf32>
    %15 = vector.broadcast %14 : vector<16x1xf32> to vector<16x256xf32>
    %16 = arith.addf %13, %15 : vector<16x256xf32>
    %c0_16 = arith.constant 0 : index
    %c0_17 = arith.constant 0 : index
    %17 = vector.load %arg8[%c0_16, %c0_17] : memref<16x256xf32, #tpu.memory_space<vmem>>, vector<16x256xf32>
    tpu.vector_store %arg8[%c0_16, %c0_17], %16 {strides = array<i32>} : memref<16x256xf32, #tpu.memory_space<vmem>>, vector<16x256xf32>,
    return
  }
  func.func @transform_0(%arg0: i32) -> (i32, i32) {
    %c0_i32 = arith.constant 0 : i32
    %c0_i32_0 = arith.constant 0 : i32
    return %arg0, %c0_i32 : i32, i32
  }
  func.func @transform_1(%arg0: i32) -> (i32, i32) {
    %c0_i32 = arith.constant 0 : i32
    %c0_i32_0 = arith.constant 0 : i32
    return %arg0, %c0_i32 : i32, i32
  }
  func.func @transform_2(%arg0: i32) -> (i32, i32) {
    %c0_i32 = arith.constant 0 : i32
    %c0_i32_0 = arith.constant 0 : i32
    %c0_i32_1 = arith.constant 0 : i32
    return %c0_i32, %c0_i32_0 : i32, i32
  }
  func.func @transform_3(%arg0: i32) -> (i32, i32) {
    %c0_i32 = arith.constant 0 : i32
    %c0_i32_0 = arith.constant 0 : i32
    %c0_i32_1 = arith.constant 0 : i32
    return %c0_i32, %c0_i32_0 : i32, i32
  }
  func.func @transform_4(%arg0: i32) -> (i32, i32) {
    %c0_i32 = arith.constant 0 : i32
    %c0_i32_0 = arith.constant 0 : i32
    %c0_i32_1 = arith.constant 0 : i32
    return %c0_i32, %c0_i32_0 : i32, i32
  }
  func.func @transform_5(%arg0: i32) -> (i32, i32) {
    %c0_i32 = arith.constant 0 : i32
    %c0_i32_0 = arith.constant 0 : i32
    %c0_i32_1 = arith.constant 0 : i32
    return %c0_i32, %c0_i32_0 : i32, i32
  }
  func.func @transform_6(%arg0: i32) -> (i32, i32) {
    %c0_i32 = arith.constant 0 : i32
    %c0_i32_0 = arith.constant 0 : i32
    %c0_i32_1 = arith.constant 0 : i32
    return %c0_i32, %c0_i32_0 : i32, i32
  }
  func.func @transform_7(%arg0: i32) -> (i32, i32) {
    %c0_i32 = arith.constant 0 : i32
    %c0_i32_0 = arith.constant 0 : i32
    return %c0_i32, %arg0 : i32, i32
  }
}

</mosaic_0001>

<bundles_post_ra>
// kernel: instance_segmentation_forward.1
= control target key start
LH: loop header
LB: loop body
LE: loop exit
PB: predicated region body
PF: predicated region fallthrough
CT: control target
= control target key end

     0   :  { %vm99_vm0 = vcmask 23552   ;;  %vm297_vm1 = vcmask 105472   ;;  %v954_v7 = vmov 0   ;;  %s1351_s0 = inlined_call_operand.vmem [shape: f32[256,13], index: 0, kind: input, shape index: {}]   ;;  %s1352_s1 = inlined_call_operand.vmem [shape: f32[256,3], index: 1, kind: input, shape index: {}]   ;;  %s1353_s2 = inlined_call_operand.vmem [shape: f32[32,13], index: 2, kind: input, shape index: {}]   ;;  %s1354_s3 = inlined_call_operand.vmem [shape: f32[32,3], index: 3, kind: input, shape index: {}]   ;;  %s1355_s4 = inlined_call_operand.vmem [shape: f32[32,1], index: 4, kind: input, shape index: {}]   ;;  %s1356_s5 = inlined_call_operand.vmem [shape: f32[16,32], index: 5, kind: input, shape index: {}]   ;;  %s1357_s6 = inlined_call_operand.vmem [shape: f32[16,1], index: 6, kind: input, shape index: {}]   ;;  %s1358_s7 = inlined_call_operand.hbm [shape: f32[16,256], index: 7, kind: output, shape index: {}]  }
   0x1   :  { %v83_v0 = vld [vmem:[%s1352_s1 + $0x80] sm:$0xff]  ;;  %v84_v1 = vld [vmem:[%s1352_s1 + $0x88] sm:$0xff]  ;;  %vm1010_vm2 = vmpackc.low %vm99_vm0, %vm99_vm0  ;;  %928 = vset.pattern.permute.xlu0 %v954_v7  ;;  %929 = vset.pattern.permute.xlu1 %v954_v7 }
   0x2   :  { %v47_v2 = vld [vmem:[%s1351_s0 + $0x80] sm:$0xff]  ;;  %v807_v3 = vpack.c.bf16 %v84_v1, %v83_v0  ;;  %v48_v5 = vld [vmem:[%s1351_s0 + $0x88] sm:$0xff]  ;;  %vm1022_vm3 = vmpackc.low %vm297_vm1, %vm297_vm1 }
   0x3   :  { %v67_v6 = vld [vmem:[%s1352_s1] sm:$0xff]  ;;  %v855_v8 = vpack.c.bf16 %v48_v5, %v47_v2  ;;  %v68_v10 = vld [vmem:[%s1352_s1 + $0x8] sm:$0xff]  ;;  %v85_v14 = vld [vmem:[%s1352_s1 + $0x90] sm:$0xff] }
   0x4   :  { %v31_v11 = vld [vmem:[%s1351_s0] sm:$0xff]  ;;  %809 = vmatprep.subr.msk.bf16.mxu1 %vm1010_vm2, %v807_v3  ;;  %v810_v12 = vpack.c.bf16 %v68_v10, %v67_v6  ;;  %v32_v13 = vld [vmem:[%s1351_s0 + $0x8] sm:$0xff]  ;;  %v86_v15 = vld [vmem:[%s1352_s1 + $0x98] sm:$0xff] }
   0x5   :  { %857 = vmatprep.subr.msk.bf16.mxu0 %vm1022_vm3, %v855_v8  ;;  %v858_v16 = vpack.c.bf16 %v32_v13, %v31_v11  ;;  %v813_v17 = vpack.c.bf16 %v86_v15, %v85_v14  ;;  %v49_v18 = vld [vmem:[%s1351_s0 + $0x90] sm:$0xff]  ;;  %v50_v19 = vld [vmem:[%s1351_s0 + $0x98] sm:$0xff]  ;;  %v87_v25 = vld [vmem:[%s1352_s1 + $0xa0] sm:$0xff] }
   0x6   :  { %812 = vmatpush3.bf16.xpose.msk.msra.mxu1 %vm1010_vm2, %v810_v12  ;;  %v861_v20 = vpack.c.bf16 %v50_v19, %v49_v18  ;;  %v69_v21 = vld [vmem:[%s1352_s1 + $0x10] sm:$0xff]  ;;  %v70_v22 = vld [vmem:[%s1352_s1 + $0x18] sm:$0xff]  ;;  %v88_v26 = vld [vmem:[%s1352_s1 + $0xa8] sm:$0xff] }
   0x7   :  { %860 = vmatpush3.bf16.xpose.msk.msra.mxu0 %vm1022_vm3, %v858_v16  ;;  %815 = vmatprep.subr.msk.bf16.mxu1 %vm1010_vm2, %v813_v17  ;;  %v33_v23 = vld [vmem:[%s1351_s0 + $0x10] sm:$0xff]  ;;  %v34_v24 = vld [vmem:[%s1351_s0 + $0x18] sm:$0xff]  ;;  %v51_v27 = vld [vmem:[%s1351_s0 + $0xa0] sm:$0xff]  ;;  %v816_v29 = vpack.c.bf16 %v70_v22, %v69_v21  ;;  %v819_v31 = vpack.c.bf16 %v88_v26, %v87_v25 }
   0x8   :  { %863 = vmatprep.subr.msk.bf16.mxu0 %vm1022_vm3, %v861_v20  ;;  %v52_v28 = vld [vmem:[%s1351_s0 + $0xa8] sm:$0xff]  ;;  %v864_v30 = vpack.c.bf16 %v34_v24, %v33_v23  ;;  %v71_v33 = vld [vmem:[%s1352_s1 + $0x20] sm:$0xff]  ;;  %v89_v37 = vld [vmem:[%s1352_s1 + $0xb0] sm:$0xff] }
   0x9   :  { %v867_v32 = vpack.c.bf16 %v52_v28, %v51_v27  ;;  %v72_v34 = vld [vmem:[%s1352_s1 + $0x28] sm:$0xff]  ;;  %v35_v35 = vld [vmem:[%s1351_s0 + $0x20] sm:$0xff]  ;;  %v90_v38 = vld [vmem:[%s1352_s1 + $0xb8] sm:$0xff] }
   0xa   :  { %v36_v36 = vld [vmem:[%s1351_s0 + $0x28] sm:$0xff]  ;;  %v53_v39 = vld [vmem:[%s1351_s0 + $0xb0] sm:$0xff]  ;;  %v54_v40 = vld [vmem:[%s1351_s0 + $0xb8] sm:$0xff]  ;;  %v822_v41 = vpack.c.bf16 %v72_v34, %v71_v33  ;;  %v825_v43 = vpack.c.bf16 %v90_v38, %v89_v37 }
   0xb   :  { %v870_v42 = vpack.c.bf16 %v36_v36, %v35_v35  ;;  %v873_v44 = vpack.c.bf16 %v54_v40, %v53_v39  ;;  %v73_v45 = vld [vmem:[%s1352_s1 + $0x30] sm:$0xff]  ;;  %v74_v46 = vld [vmem:[%s1352_s1 + $0x38] sm:$0xff]  ;;  %v1133_v48 = vld [vmem:[%s1354_s3] sm:$0xff] }
   0xc   :  { %v37_v47 = vld [vmem:[%s1351_s0 + $0x30] sm:$0xff]  ;;  %v1138_v49 = vld [vmem:[%s1353_s2] sm:$0xff]  ;;  %v38_v50 = vld [vmem:[%s1351_s0 + $0x38] sm:$0xff]  ;;  %759 = vmatprep.mubr.msk.f32.mxu1 %vm99_vm0, %v1133_v48  ;;  %v828_v56 = vpack.c.bf16 %v74_v46, %v73_v45 }
   0xd   :  { %v91_v51 = vld [vmem:[%s1352_s1 + $0xc0] sm:$0xff]  ;;  %v92_v52 = vld [vmem:[%s1352_s1 + $0xc8] sm:$0xff]  ;;  %799 = vmatprep.mubr.msk.f32.mxu0 %vm297_vm1, %v1138_v49  ;;  %v497_v57 = vld [vmem:[%s1355_s4 + $0x10] sm:$0xff]  ;;  %v876_v58 = vpack.c.bf16 %v38_v50, %v37_v47 }
   0xe   :  { %818 = vmatpush3.bf16.xpose.msk.msra.mxu1 %vm1010_vm2, %v816_v29  ;;  %v55_v53 = vld [vmem:[%s1351_s0 + $0xc0] sm:$0xff]  ;;  %v56_v54 = vld [vmem:[%s1351_s0 + $0xc8] sm:$0xff]  ;;  %v831_v59 = vpack.c.bf16 %v92_v52, %v91_v51  ;;  %511 = vperm.xlu1 %929, %v497_v57  }
   0xf   :  { %866 = vmatpush3.bf16.xpose.msk.msra.mxu0 %vm1022_vm3, %v864_v30  ;;  %821 = vmatprep.subr.msk.bf16.mxu1 %vm1010_vm2, %v819_v31  ;;  %v495_v55 = vld [vmem:[%s1355_s4] sm:$0xff]  ;;  %v496_v60 = vld [vmem:[%s1355_s4 + $0x8] sm:$0xff] }
  0x10   :  { %869 = vmatprep.subr.msk.bf16.mxu0 %vm1022_vm3, %v867_v32  ;;  %501 = vperm.xlu0 %928, %v495_v55  }
  0x16   :  { %824 = vmatpush3.bf16.xpose.msk.msra.mxu1 %vm1010_vm2, %v822_v41 }
  0x17   :  { %872 = vmatpush3.bf16.xpose.msk.msra.mxu0 %vm1022_vm3, %v870_v42  ;;  %827 = vmatprep.subr.msk.bf16.mxu1 %vm1010_vm2, %v825_v43 }
  0x18   :  { %875 = vmatprep.subr.msk.bf16.mxu0 %vm1022_vm3, %v873_v44 }
  0x19   :  { %12 = vsyncpa [#allocation3], 0  ;;  %v879_v61 = vpack.c.bf16 %v56_v54, %v55_v53  ;;  %v498_v62 = vld [vmem:[%s1355_s4 + $0x18] sm:$0xff]  ;;  %v75_v63 = vld [vmem:[%s1352_s1 + $0x40] sm:$0xff]  ;;  %506 = vperm.xlu0 %928, %v496_v60   ;;  %vm549_vm4 = vcmask 261120  }
  0x1a   :  { %v76_v0 = vld [vmem:[%s1352_s1 + $0x48] sm:$0xff]  ;;  %v39_v1 = vld [vmem:[%s1351_s0 + $0x40] sm:$0xff]  ;;  %v93_v5 = vld [vmem:[%s1352_s1 + $0xd0] sm:$0xff]  ;;  %516 = vperm.xlu1 %929, %v498_v62  }
  0x1b   :  { %v537_v2 = vld [vmem:[%s1357_s6] sm:$0xff]  ;;  %v40_v3 = vld [vmem:[%s1351_s0 + $0x48] sm:$0xff]  ;;  %v94_v6 = vld [vmem:[%s1352_s1 + $0xd8] sm:$0xff]  ;;  %v834_v11 = vpack.c.bf16 %v76_v0, %v75_v63 }
  0x1c   :  { %v57_v7 = vld [vmem:[%s1351_s0 + $0xd0] sm:$0xff]  ;;  %v58_v8 = vld [vmem:[%s1351_s0 + $0xd8] sm:$0xff]  ;;  %v538_v10 = vld [vmem:[%s1357_s6 + $0x8] sm:$0xff]  ;;  %v882_v12 = vpack.c.bf16 %v40_v3, %v39_v1  ;;  %v837_v13 = vpack.c.bf16 %v94_v6, %v93_v5  ;;  %s956_s6 = smov [#allocation2]  }
  0x1d   :  { %541 = vperm.xlu0 %928, %v537_v2   ;;  %v885_v14 = vpack.c.bf16 %v58_v8, %v57_v7  ;;  %v77_v15 = vld [vmem:[%s1352_s1 + $0x50] sm:$0xff]  ;;  %v78_v16 = vld [vmem:[%s1352_s1 + $0x58] sm:$0xff]  ;;  %v95_v19 = vld [vmem:[%s1352_s1 + $0xe0] sm:$0xff]  ;;  %s642_s14 = sshll.u32 %s956_s6, 4  ;;  %s643_s14 = int_to_ptr.vmem [resolvable:$true] %s642_s14 }
  0x1e   :  { %830 = vmatpush3.bf16.xpose.msk.msra.mxu1 %vm1010_vm2, %v828_v56  ;;  %546 = vperm.xlu1 %929, %v538_v10   ;;  %v41_v17 = vld [vmem:[%s1351_s0 + $0x50] sm:$0xff]  ;;  %v42_v18 = vld [vmem:[%s1351_s0 + $0x58] sm:$0xff]  ;;  %v96_v20 = vld [vmem:[%s1352_s1 + $0xe8] sm:$0xff]  ;;  %v840_v23 = vpack.c.bf16 %v78_v16, %v77_v15  ;;  %p935_p1 = scmp.lt.s32.totalorder %s643_s14, %s643_s14 }
  0x1f   :  { %878 = vmatpush3.bf16.xpose.msk.msra.mxu0 %vm1022_vm3, %v876_v58  ;;  %833 = vmatprep.subr.msk.bf16.mxu1 %vm1010_vm2, %v831_v59  ;;  %v59_v21 = vld [vmem:[%s1351_s0 + $0xe0] sm:$0xff]  ;;  %v60_v22 = vld [vmem:[%s1351_s0 + $0xe8] sm:$0xff]  ;;  %v888_v24 = vpack.c.bf16 %v42_v18, %v41_v17  ;;  %v843_v25 = vpack.c.bf16 %v96_v20, %v95_v19  ;;  %v97_v31 = vld [vmem:[%s1352_s1 + $0xf0] sm:$0xff] }
  0x20   :  { %881 = vmatprep.subr.msk.bf16.mxu0 %vm1022_vm3, %v879_v61  ;;  %v891_v26 = vpack.c.bf16 %v60_v22, %v59_v21  ;;  %v79_v27 = vld [vmem:[%s1352_s1 + $0x60] sm:$0xff]  ;;  %v80_v28 = vld [vmem:[%s1352_s1 + $0x68] sm:$0xff]  ;;  %v98_v32 = vld [vmem:[%s1352_s1 + $0xf8] sm:$0xff] }
  0x21   :  { %v43_v29 = vld [vmem:[%s1351_s0 + $0x60] sm:$0xff]  ;;  %v44_v30 = vld [vmem:[%s1351_s0 + $0x68] sm:$0xff]  ;;  %v61_v33 = vld [vmem:[%s1351_s0 + $0xf0] sm:$0xff]  ;;  %v846_v35 = vpack.c.bf16 %v80_v28, %v79_v27  ;;  %v849_v37 = vpack.c.bf16 %v98_v32, %v97_v31 }
  0x22   :  { %v62_v34 = vld [vmem:[%s1351_s0 + $0xf8] sm:$0xff]  ;;  %v894_v36 = vpack.c.bf16 %v44_v30, %v43_v29  ;;  %v81_v39 = vld [vmem:[%s1352_s1 + $0x70] sm:$0xff]  ;;  %v64_v45 = vld [vmem:[%s1354_s3 + $0x8] sm:$0xff] }
  0x23   :  { %v897_v38 = vpack.c.bf16 %v62_v34, %v61_v33  ;;  %v82_v40 = vld [vmem:[%s1352_s1 + $0x78] sm:$0xff]  ;;  %v45_v41 = vld [vmem:[%s1351_s0 + $0x70] sm:$0xff]  ;;  %v28_v46 = vld [vmem:[%s1353_s2 + $0x8] sm:$0xff] }
  0x24   :  { %v46_v42 = vld [vmem:[%s1351_s0 + $0x78] sm:$0xff]  ;;  %v852_v43 = vpack.c.bf16 %v82_v40, %v81_v39  ;;  %v65_v4 = vld [vmem:[%s1354_s3 + $0x10] sm:$0xff] }
  0x25   :  { %v900_v44 = vpack.c.bf16 %v46_v42, %v45_v41  ;;  %v29_v9 = vld [vmem:[%s1353_s2 + $0x10] sm:$0xff]  ;;  %v66_v47 = vld [vmem:[%s1354_s3 + $0x18] sm:$0xff] }
  0x26   :  { %836 = vmatpush3.bf16.xpose.msk.msra.mxu1 %vm1010_vm2, %v834_v11 }
  0x27   :  { %884 = vmatpush3.bf16.xpose.msk.msra.mxu0 %vm1022_vm3, %v882_v12  ;;  %839 = vmatprep.subr.msk.bf16.mxu1 %vm1010_vm2, %v837_v13 }
  0x28   :  { %887 = vmatprep.subr.msk.bf16.mxu0 %vm1022_vm3, %v885_v14 }
  0x2e   :  { %842 = vmatpush3.bf16.xpose.msk.msra.mxu1 %vm1010_vm2, %v840_v23 }
  0x2f   :  { %890 = vmatpush3.bf16.xpose.msk.msra.mxu0 %vm1022_vm3, %v888_v24  ;;  %845 = vmatprep.subr.msk.bf16.mxu1 %vm1010_vm2, %v843_v25 }
  0x30   :  { %893 = vmatprep.subr.msk.bf16.mxu0 %vm1022_vm3, %v891_v26 }
  0x36   :  { %848 = vmatpush3.bf16.xpose.msk.msra.mxu1 %vm1010_vm2, %v846_v35 }
  0x37   :  { %896 = vmatpush3.bf16.xpose.msk.msra.mxu0 %vm1022_vm3, %v894_v36  ;;  %851 = vmatprep.subr.msk.bf16.mxu1 %vm1010_vm2, %v849_v37  ;;  %v535_v36 = vld [vmem:[%s1356_s5] sm:$0xff]  ;;  %v536_v37 = vld [vmem:[%s1356_s5 + $0x8] sm:$0xff]  ;;  %s930_s5 = scalar_lea.vmem %s643_s14, 512 }
  0x38   :  { %899 = vmatprep.subr.msk.bf16.mxu0 %vm1022_vm3, %v897_v38  ;;  %p931_p0 = scmp.ne.s32.totalorder %s643_s14, %s930_s5  ;;  %p936_p2 = scmp.lt.s32.totalorder %s930_s5, %s930_s5 }
  0x3a   :  { %p937_p3 = por %p936_p2, %p935_p1 }
  0x3c   :  { %p938_p4 = pnand %p937_p3, %p931_p0 }
  0x3e   :  { %854 = vmatpush3.bf16.xpose.msk.msra.mxu1 %vm1010_vm2, %v852_v43 }
  0x3f   :  { %902 = vmatpush3.bf16.xpose.msk.msra.mxu0 %vm1022_vm3, %v900_v44 }
  0x45   :  { %760 = vmatmul.mubr.msk.f32.vlgmr.msra.gmra.mrb[0].mxu1 %vm99_vm0, %v1133_v48  ;;  %v30_v48 = vld [vmem:[%s1353_s2 + $0x18] sm:$0xff] }
  0x46   :  { %800 = vmatmul.mubr.msk.f32.vlgmr.msra.gmra.mrb[0].mxu0 %vm297_vm1, %v1138_v49  ;;  %761 = vmatprep.mubr.msk.f32.mxu1 %vm99_vm0, %v64_v45  ;;  %v955_v49 = vmov 0.0  }
  0x47   :  { %801 = vmatprep.mubr.msk.f32.mxu0 %vm297_vm1, %v28_v46 }
  0x49   :  { %762 = vmatmul.mubr.msk.f32.gmra.mrb[2].mxu1 %vm99_vm0, %v64_v45 }
  0x4a   :  { %802 = vmatmul.mubr.msk.f32.gmra.mrb[2].mxu0 %vm297_vm1, %v28_v46  ;;  %763 = vmatprep.mubr.msk.f32.mxu1 %vm99_vm0, %v65_v4 }
  0x4b   :  { %803 = vmatprep.mubr.msk.f32.mxu0 %vm297_vm1, %v29_v9 }
  0x4d   :  { %764 = vmatmul.mubr.msk.f32.gmra.mrb[4].mxu1 %vm99_vm0, %v65_v4 }
  0x4e   :  { %804 = vmatmul.mubr.msk.f32.gmra.mrb[4].mxu0 %vm297_vm1, %v29_v9  ;;  %765 = vmatprep.mubr.msk.f32.mxu1 %vm99_vm0, %v66_v47 }
  0x4f   :  { %805 = vmatprep.mubr.msk.f32.mxu0 %vm297_vm1, %v30_v48 }
  0x51   :  { %766 = vmatmul.mubr.msk.f32.gmra.mrb[6].mxu1 %vm99_vm0, %v66_v47 }
  0x52   :  { %806 = vmatmul.mubr.msk.f32.gmra.mrb[6].mxu0 %vm297_vm1, %v30_v48  ;;  %626 = vmatprep.mubr.f32.mxu1 %v955_v49 }
  0x53   :  { %620 = vmatprep.mubr.f32.mxu0 %v955_v49 }
  0x8d   :  { %v512_v2 = vpop.permute.xlu1 %511 }
  0x8f   :  { %v502_v50 = vpop.permute.xlu0 %501 }
  0x98   :  { %v507_v63 = vpop.permute.xlu0 %506 }
  0x99   :  { %v517_v25 = vpop.permute.xlu1 %516 }
  0x9c   :  { %v542_v38 = vpop.permute.xlu0 %541 }
  0x9d   :  { %v547_v39 = vpop.permute.xlu1 %546 }
 0x118   :  { %v274_v51 = vpop.f32.mrb[0].mxu1 }
 0x119   :  { %v472_v52 = vpop.f32.mrb[0].mxu0  ;;  %v276_v53 = vpop.f32.mrb[1].mxu1 }
 0x11a   :  { %v473_v54 = vadd.f32 %v472_v52, %v274_v51  ;;  %v474_v55 = vpop.f32.mrb[1].mxu0 }
 0x11b   :  { %v475_v56 = vadd.f32 %v474_v55, %v276_v53 }
 0x11c   :  { %v280_v57 = vpop.f32.mrb[2].mxu1  ;;  %v519_v60 = vadd.f32 %v502_v50, %v473_v54 }
 0x11d   :  { %v478_v58 = vpop.f32.mrb[2].mxu0  ;;  %v282_v59 = vpop.f32.mrb[3].mxu1  ;;  %v520_v0 = vadd.f32 %v502_v50, %v475_v56 }
 0x11e   :  { %v479_v61 = vadd.f32 %v478_v58, %v280_v57  ;;  %v480_v62 = vpop.f32.mrb[3].mxu0  ;;  %v527_v10 = vmax.f32 %v519_v60, 0.0 }
 0x11f   :  { %v481_v1 = vadd.f32 %v480_v62, %v282_v59  ;;  %v528_v14 = vmax.f32 %v520_v0, 0.0 }
 0x120   :  { %v521_v3 = vadd.f32 %v507_v63, %v479_v61  ;;  %v286_v5 = vpop.f32.mrb[4].mxu1 }
 0x121   :  { %v522_v6 = vadd.f32 %v507_v63, %v481_v1  ;;  %v484_v7 = vpop.f32.mrb[4].mxu0  ;;  %v288_v8 = vpop.f32.mrb[5].mxu1 }
 0x122   :  { %v529_v11 = vmax.f32 %v521_v3, 0.0  ;;  %v485_v12 = vadd.f32 %v484_v7, %v286_v5  ;;  %v486_v13 = vpop.f32.mrb[5].mxu0 }
 0x123   :  { %v530_v15 = vmax.f32 %v522_v6, 0.0  ;;  %v487_v16 = vadd.f32 %v486_v13, %v288_v8 }
 0x124   :  { %v905_v17 = vpack.c.bf16 %v529_v11, %v527_v10  ;;  %v292_v18 = vpop.f32.mrb[6].mxu1  ;;  %v523_v22 = vadd.f32 %v512_v2, %v485_v12 }
 0x125   :  { %v490_v19 = vpop.f32.mrb[6].mxu0  ;;  %v294_v20 = vpop.f32.mrb[7].mxu1  ;;  %v903_v21 = vpack.c.bf16 %v530_v15, %v528_v14  ;;  %v524_v26 = vadd.f32 %v512_v2, %v487_v16 }
 0x126   :  { %v491_v23 = vadd.f32 %v490_v19, %v292_v18  ;;  %v492_v24 = vpop.f32.mrb[7].mxu0  ;;  %v531_v30 = vmax.f32 %v523_v22, 0.0 }
 0x127   :  { %v493_v27 = vadd.f32 %v492_v24, %v294_v20  ;;  %904 = vmatprep.subr.bf16.mxu0 %v903_v21  ;;  %911 = vmatprep.subr.bf16.mxu1 %v903_v21  ;;  %v532_v32 = vmax.f32 %v524_v26, 0.0 }
 0x128   :  { %v525_v28 = vadd.f32 %v517_v25, %v491_v23  ;;  %906 = vmatpush1.bf16.msra.mxu0 %v905_v17  ;;  %913 = vmatpush1.bf16.msra.mxu1 %v905_v17 }
 0x129   :  { %v526_v29 = vadd.f32 %v517_v25, %v493_v27 }
 0x12a   :  { %v533_v31 = vmax.f32 %v525_v28, 0.0 }
 0x12b   :  { %v534_v33 = vmax.f32 %v526_v29, 0.0 }
 0x12c   :  { %v909_v34 = vpack.c.bf16 %v533_v31, %v531_v30 }
 0x12d   :  { %v907_v35 = vpack.c.bf16 %v534_v33, %v532_v32 }
 0x12f   :  { %908 = vmatprep.subr.bf16.mxu0 %v907_v35  ;;  %912 = vmatprep.subr.bf16.mxu1 %v907_v35 }
 0x130   :  { %910 = vmatpush1.bf16.msra.mxu0 %v909_v34  ;;  %914 = vmatpush1.bf16.msra.mxu1 %v909_v34 }
 0x133   :  { %725 = vmatmul.mubr.msk.f32.vlgmr.msra.gmra.mrb[8].mxu0 %vm549_vm4, %v535_v36  ;;  %726 = vmatmul.mubr.msk.f32.vlgmr.msra.gmra.mrb[8].mxu1 %vm549_vm4, %v536_v37 }
 0x206   :  { %v622_v40 = vpop.f32.mrb[8].mxu0  ;;  %v628_v41 = vpop.f32.mrb[8].mxu1 }
 0x207   :  { %v623_v42 = vadd.f32 %v622_v40, %v542_v38  ;;  %v629_v43 = vadd.f32 %v628_v41, %v547_v39  ;;  %v624_v44 = vpop.f32.mrb[9].mxu0  ;;  %v630_v45 = vpop.f32.mrb[9].mxu1 }
 0x208   :  { %v625_v46 = vadd.f32 %v624_v44, %v542_v38  ;;  %v631_v4 = vadd.f32 %v630_v45, %v547_v39 }
 0x209   :  { %633 = vst [vmem:[#allocation2] sm:$0xff] %v623_v42  ;;  %635 = vst [vmem:[#allocation2 + $0x10] sm:$0xff] %v629_v43 }
 0x20a   :  { %634 = vst [vmem:[#allocation2 + $0x8] sm:$0xff] %v625_v46  ;;  %636 = vst [vmem:[#allocation2 + $0x18] sm:$0xff] %v631_v4 }
 0x20b   :  { %941 = shalt.err (!%p938_p4)
}
 0x20c   :  { %s942_s17 = scalar_lea.hbm %s1358_s7, 512 }
 0x20d   :  { %p943_p5 = scmp.ne.s32.totalorder %s1358_s7, %s942_s17  ;;  %p946_p6 = scmp.lt.u32.totalorder %s942_s17, %s1358_s7 }
 0x20f   :  { %p948_p7 = pnand %p946_p6, %p943_p5 }
 0x211   :  { %951 = shalt.err (!%p948_p7)
}
 0x212   :  { %s957_s21 = smov 256   ;;  %s958_s22 = smov 16  }
 0x213   :  { %648 = dma.vmem_to_hbm [thread:$0]  %s643_s14, 512, %s1358_s7, [#allocation3], %s957_s21, %s957_s21, %s958_s22  }
 0x214   :  { %952 = dma.done.wait [#allocation3], 512  }
 0x215   :  { %953 = vsyncadd [#allocation3], 4294966784 }
 0x216   :  { %652 = vsyncpa [#allocation3], 1 }

</bundles_post_ra>
